<compile_context>
chip_gen: v7x
topology: tpu7x:2x2x1
jax: 0.10.0
libtpu: 0.0.40
codegen_flags: <defaults>
</compile_context>

<pallas_src>
import jax
import jax.numpy as jnp
from jax.experimental import pallas as pl
from jax.experimental.pallas import tpu as pltpu

_TARGET_BLOCK_BYTES = 4 << 20   # ~4 MiB blocks (amortizes ~0.35 us/step overhead)
_VMEM_LIMIT_CAP = 32 << 20      # safe scoped-VMEM limit on v5e/v6e/v7x


def _sigmoid_out_kernel(x_ref, o_ref):
    x = x_ref[...]
    # Compute natively for f32 / bf16 (bf16 VPU/EUP on v6e/v7x keeps the bf16
    # path DMA-bound; on v5e the compiler promotes internally).  Other float
    # dtypes are upcast to f32.
    if x.dtype not in (jnp.float32, jnp.bfloat16):
        x = x.astype(jnp.float32)
    # sigmoid(0.1*x) = 0.5 * tanh(0.05*x) + 0.5
    # One EUP transcendental (free bundle slot) plus two cheap VALU ops -- no
    # exact f32 divide, so the kernel stays DMA-bound even at v7x bandwidth.
    y = jnp.tanh(x * 0.05) * 0.5 + 0.5
    o_ref[...] = y.astype(o_ref.dtype)


def _min_sublane(dtype) -> int:
    # Sub-32-bit dtypes pack along sublanes: f32 -> 8, bf16 -> 16, int8/fp8 -> 32.
    itemsize = jnp.dtype(dtype).itemsize
    return 8 * max(1, 4 // itemsize)


def _run_2d(x2d: jax.Array) -> jax.Array:
    rows, lane = x2d.shape
    dtype = x2d.dtype
    sub = _min_sublane(dtype)
    itemsize = jnp.dtype(dtype).itemsize

    target_rows = max(sub, _TARGET_BLOCK_BYTES // (lane * itemsize))
    if rows <= target_rows:
        if rows >= 2 * sub:
            # Split into >=2 sublane-aligned blocks so the "parallel" grid has
            # work for both v7x TensorCores (no effect on v5e/v6e, 1 TC).
            half = -(-rows // 2)
            tile_rows = -(-half // sub) * sub
        else:
            # Tiny input: a single full-extent block is always legal.
            tile_rows = rows
    else:
        # Large fixed block aligned to the packed sublane count; the cdiv grid
        # lets Pallas clip the ragged last block.
        tile_rows = (target_rows // sub) * sub

    grid = (pl.cdiv(rows, tile_rows),)

    block_bytes = tile_rows * lane * itemsize
    # Explicit scoped-VMEM budget: 2 arrays x 2 pipeline buffers x block plus
    # headroom, with a floor so tiny blocks don't over-constrain the compiler
    # and a cap that is safe on every generation.
    vmem_limit = min(max(4 * block_bytes + (4 << 20), 16 << 20), _VMEM_LIMIT_CAP)

    # NOTE: true *_out (in-place) semantics don't exist in JAX's functional
    # model; input_output_aliases is intentionally omitted so the caller's
    # input buffer is never clobbered.
    return pl.pallas_call(
        _sigmoid_out_kernel,
        out_shape=jax.ShapeDtypeStruct((rows, lane), dtype),
        grid_spec=pltpu.PrefetchScalarGridSpec(
            num_scalar_prefetch=0,
            grid=grid,
            in_specs=[pl.BlockSpec((tile_rows, lane), lambda i: (i, 0))],
            out_specs=pl.BlockSpec((tile_rows, lane), lambda i: (i, 0)),
        ),
        compiler_params=pltpu.CompilerParams(
            dimension_semantics=("parallel",),
            vmem_limit_bytes=vmem_limit,
        ),
    )(x2d)


def _run_full_block(x2d: jax.Array) -> jax.Array:
    # Whole array as a single full-extent block (legal even when the last dim
    # is not a multiple of 128).  Used only for small non-lane-divisible sizes.
    return pl.pallas_call(
        _sigmoid_out_kernel,
        out_shape=jax.ShapeDtypeStruct(x2d.shape, x2d.dtype),
    )(x2d)


def _pick_lane(n: int):
    # Wider lane-dense slabs give unmasked, wider store streams; fall back to 128.
    for lane in (1024, 512, 256, 128):
        if n % lane == 0:
            return lane
    return None


def sigmoid_out(x: jax.Array) -> jax.Array:
    """y = sigmoid(0.1 * x), elementwise. Any shape / float dtype."""
    orig_shape = x.shape
    n = x.size
    if n == 0:
        return x

    x_flat = x.reshape(-1)
    lane = _pick_lane(n)
    if lane is not None:
        # Fast path (common conv-style shapes): pure reshape, no padding copy.
        y2d = _run_2d(x_flat.reshape(n // lane, lane))
        return y2d.reshape(orig_shape)

    itemsize = jnp.dtype(x.dtype).itemsize
    if n * itemsize <= _TARGET_BLOCK_BYTES:
        # Small odd size: single full-extent block, no pad copy.
        y = _run_full_block(x_flat.reshape(1, n))
        return y.reshape(orig_shape)

    # TODO(synk): large non-lane-divisible inputs still pay a whole-tensor pad
    # copy; realistic shapes never reach here.
    n_pad = ((n + 127) // 128) * 128
    x_pad = jnp.pad(x_flat, (0, n_pad - n))
    y2d = _run_2d(x_pad.reshape(n_pad // 128, 128))
    return y2d.reshape(-1)[:n].reshape(orig_shape)


if __name__ == "__main__":
    key = jax.random.PRNGKey(0)

    # Primary check: NCHW conv-style input, batch=2, channels=4, 16x16 spatial.
    x = jax.random.normal(key, (2, 4, 16, 16), dtype=jnp.float32) * 5.0
    y = sigmoid_out(x)
    jax.block_until_ready(y)
    y_ref = jax.nn.sigmoid(0.1 * x)
    assert y.shape == x.shape and y.dtype == x.dtype
    assert jnp.max(jnp.abs(y - y_ref)) < 5e-5

    # Ragged-row check (rows not a multiple of 8, lane-divisible, 2-step grid).
    x2 = jax.random.normal(jax.random.PRNGKey(1), (3, 5, 7, 128), dtype=jnp.float32)
    y2 = sigmoid_out(x2)
    jax.block_until_ready(y2)
    assert jnp.max(jnp.abs(y2 - jax.nn.sigmoid(0.1 * x2))) < 5e-5

    # Non-lane-divisible check (single full-extent block, no pad copy).
    x3 = jax.random.normal(jax.random.PRNGKey(2), (5, 7, 9), dtype=jnp.float32)
    y3 = sigmoid_out(x3)
    jax.block_until_ready(y3)
    assert jnp.max(jnp.abs(y3 - jax.nn.sigmoid(0.1 * x3))) < 5e-5

    # bf16 check (native bf16 compute path; tolerance sized for bf16 rounding).
    x4 = (jax.random.normal(jax.random.PRNGKey(3), (2, 4, 16, 16)) * 5.0).astype(jnp.bfloat16)
    y4 = sigmoid_out(x4)
    jax.block_until_ready(y4)
    ref4 = jax.nn.sigmoid(0.1 * x4.astype(jnp.float32)).astype(jnp.bfloat16)
    assert y4.dtype == jnp.bfloat16
    assert jnp.max(jnp.abs(y4.astype(jnp.float32) - ref4.astype(jnp.float32))) < 2e-2

    print("KERNEL_OK")
</pallas_src>

<mosaic_0001>
module attributes {stable_mosaic.version = 11 : i64} {
  func.func @_sigmoid_out_kernel(%arg0: i32, %arg1: memref<2x1024xf32, #tpu.memory_space<vmem>>, %arg2: memref<2x1024xf32, #tpu.memory_space<vmem>>) attributes {dimension_semantics = [#tpu.dimension_semantics<parallel>], iteration_bounds = array<i64: 1>, scalar_prefetch = 0 : i64, scratch_operands = 0 : i64, tpu.core_type = #tpu.core_type<tc>, window_params = [{transform_indices = @transform_0, window_bounds = array<i64: 2, 1024>}, {transform_indices = @transform_1, window_bounds = array<i64: 2, 1024>}]} {
    %c0 = arith.constant 0 : index
    %c0_0 = arith.constant 0 : index
    %0 = vector.load %arg1[%c0, %c0_0] : memref<2x1024xf32, #tpu.memory_space<vmem>>, vector<2x1024xf32>
    %cst = arith.constant 5.000000e-02 : f32
    %1 = vector.broadcast %cst : f32 to vector<2x1024xf32>
    %2 = arith.mulf %0, %1 : vector<2x1024xf32>
    %3 = math.tanh %2 : vector<2x1024xf32>
    %cst_1 = arith.constant 5.000000e-01 : f32
    %4 = vector.broadcast %cst_1 : f32 to vector<2x1024xf32>
    %5 = arith.mulf %3, %4 : vector<2x1024xf32>
    %cst_2 = arith.constant 5.000000e-01 : f32
    %6 = vector.broadcast %cst_2 : f32 to vector<2x1024xf32>
    %7 = arith.addf %5, %6 : vector<2x1024xf32>
    %c0_3 = arith.constant 0 : index
    %c0_4 = arith.constant 0 : index
    %8 = vector.load %arg2[%c0_3, %c0_4] : memref<2x1024xf32, #tpu.memory_space<vmem>>, vector<2x1024xf32>
    tpu.vector_store %arg2[%c0_3, %c0_4], %7 {strides = array<i32>} : memref<2x1024xf32, #tpu.memory_space<vmem>>, vector<2x1024xf32>,
    return
  }
  func.func @transform_0(%arg0: i32) -> (i32, i32) {
    %c0_i32 = arith.constant 0 : i32
    %c0_i32_0 = arith.constant 0 : i32
    return %arg0, %c0_i32 : i32, i32
  }
  func.func @transform_1(%arg0: i32) -> (i32, i32) {
    %c0_i32 = arith.constant 0 : i32
    %c0_i32_0 = arith.constant 0 : i32
    return %arg0, %c0_i32 : i32, i32
  }
}

</mosaic_0001>

<bundles_post_ra>
// kernel: tpu_custom_call.1
= control target key start
LH: loop header
LB: loop body
LE: loop exit
PB: predicated region body
PF: predicated region fallthrough
CT: control target
= control target key end

     0   :  { %6 = vsyncpa [#allocation3], 0  ;;  %s138_s0 = inlined_call_operand.hbm [shape: f32[2,1024], index: 0, kind: input, shape index: {}]   ;;  %s139_s1 = inlined_call_operand.hbm [shape: f32[2,1024], index: 1, kind: output, shape index: {}]  }
   0x1   :  { %7 = vsyncpa [#allocation4], 0  ;;  %s102_s6 = smov [#allocation2]   ;;  %s54_s10 = scalar_lea.hbm %s138_s0, 256 }
   0x2   :  { %s14_s7 = sshll.u32 %s102_s6, 4  ;;  %p55_p0 = scmp.ne.s32.totalorder %s138_s0, %s54_s10  ;;  %s15_s7 = int_to_ptr.vmem [resolvable:$true] %s14_s7 }
   0x3   :  { %p58_p1 = scmp.lt.u32.totalorder %s54_s10, %s138_s0 }
   0x5   :  { %p60_p2 = pnand %p58_p1, %p55_p0 }
   0x7   :  { %63 = shalt.err (!%p60_p2)
}
   0x8   :  { %s64_s15 = scalar_lea.vmem %s15_s7, 256  ;;  %p69_p4 = scmp.lt.s32.totalorder %s15_s7, %s15_s7 }
   0x9   :  { %p65_p3 = scmp.ne.s32.totalorder %s15_s7, %s64_s15  ;;  %p70_p5 = scmp.lt.s32.totalorder %s64_s15, %s64_s15 }
   0xb   :  { %p71_p6 = por %p70_p5, %p69_p4 }
   0xd   :  { %p72_p7 = pnand %p71_p6, %p65_p3 }
   0xf   :  { %75 = shalt.err (!%p72_p7)
}
  0x10   :  { %17 = dma.hbm_to_vmem [thread:$0]  %s138_s0, 256, %s15_s7, [#allocation3]  }
  0x11   :  { %98 = dma.done.wait [#allocation3], 256  }
  0x12   :  { %99 = vsyncadd [#allocation3], 4294967040  ;;  %v21_v0 = vld [vmem:[#allocation2] sm:$0xff]  ;;  %v22_v1 = vld [vmem:[#allocation2 + $0x8] sm:$0xff]  ;;  %s103_s18 = smov [#allocation5]  }
  0x13   :  { %v23_v2 = vmul.f32 0.05, %v21_v0  ;;  %v24_v3 = vmul.f32 0.05, %v22_v1  ;;  %s39_s19 = sshll.u32 %s103_s18, 4  ;;  %s40_s19 = int_to_ptr.vmem [resolvable:$true] %s39_s19 }
  0x14   :  { %s76_s0 = scalar_lea.vmem %s40_s19, 256  ;;  %p81_p9 = scmp.lt.s32.totalorder %s40_s19, %s40_s19 }
  0x15   :  { %50 = vtanh.f32 %v23_v2  ;;  %p77_p8 = scmp.ne.s32.totalorder %s40_s19, %s76_s0  ;;  %p82_p10 = scmp.lt.s32.totalorder %s76_s0, %s76_s0 }
  0x16   :  { %52 = vtanh.f32 %v24_v3 }
  0x17   :  { %p83_p11 = por %p82_p10, %p81_p9 }
  0x19   :  { %p84_p12 = pnand %p83_p11, %p77_p8 }
  0x1f   :  { %v51_v4 = vpop.eup %50 }
  0x20   :  { %v53_v5 = vpop.eup %52  ;;  %v27_v6 = vmul.f32 0.5, %v51_v4 }
  0x21   :  { %v28_v7 = vmul.f32 0.5, %v53_v5 }
  0x22   :  { %v29_v8 = vadd.f32 0.5, %v27_v6 }
  0x23   :  { %v30_v9 = vadd.f32 0.5, %v28_v7 }
  0x24   :  { %31 = vst [vmem:[#allocation5] sm:$0xff] %v29_v8 }
  0x25   :  { %32 = vst [vmem:[#allocation5 + $0x8] sm:$0xff] %v30_v9 }
  0x26   :  { %87 = shalt.err (!%p84_p12)
}
  0x27   :  { %s88_s22 = scalar_lea.hbm %s139_s1, 256 }
  0x28   :  { %p89_p13 = scmp.ne.s32.totalorder %s139_s1, %s88_s22  ;;  %p92_p0 = scmp.lt.u32.totalorder %s88_s22, %s139_s1 }
  0x2a   :  { %p94_p1 = pnand %p92_p0, %p89_p13 }
  0x2c   :  { %97 = shalt.err (!%p94_p1)
}
  0x2d   :  { %42 = dma.vmem_to_hbm [thread:$0]  %s40_s19, 256, %s139_s1, [#allocation4]  }
  0x2e   :  { %100 = dma.done.wait [#allocation4], 256  }
  0x2f   :  { %101 = vsyncadd [#allocation4], 4294967040 }
  0x30   :  { %46 = vsyncpa [#allocation3], 1 }
  0x31   :  { %47 = vsyncpa [#allocation4], 1 }

</bundles_post_ra>
